<compile_context>
chip_gen: v6e
topology: v6e:2x2x1
jax: 0.10.0
libtpu: 0.0.40
codegen_flags: <defaults>
</compile_context>

<pallas_src>
import functools

import jax
import jax.numpy as jnp
from jax.experimental import pallas as pl
from jax.experimental.pallas import tpu as pltpu

HIDDEN = 10          # fixed by the module: nn.Linear(in_features, 10), LayerNorm(10)
LN_EPS = 1e-5        # PyTorch LayerNorm default eps


# --------------------------------------------------------------------------- kernel
def toy_model_kernel(x_ref, w1t_ref, w2t_ref, bias_ref, o_ref):
    # fc1: x @ W1^T   (W1^T passed in as w1t)
    x = x_ref[...]
    h = jnp.dot(x, w1t_ref[...], preferred_element_type=jnp.float32)  # [tb, HIDDEN] f32

    # ReLU
    h = jnp.maximum(h, 0.0)

    # LayerNorm over the 10-wide hidden dim (centered two-pass variance: accurate,
    # and VPU work is irrelevant to wall time for this HBM-bound kernel).
    mean = jnp.mean(h, axis=-1, keepdims=True)
    c = h - mean
    var = jnp.mean(c * c, axis=-1, keepdims=True)
    hn = c * jax.lax.rsqrt(var + LN_EPS)

    # fc2 with gamma folded into W2 and beta folded into an output bias:
    #   (hn*gamma + beta) @ W2^T == hn @ (W2*gamma)^T + beta @ W2^T
    out = jnp.dot(hn, w2t_ref[...], preferred_element_type=jnp.float32) + bias_ref[...]
    o_ref[...] = out.astype(o_ref.dtype)


# ---------------------------------------------------------------- parameter prep
def prepare_toy_model_params(w1, w2, gamma, beta):
    """One-time parameter prep (keep OUT of the per-call / jit'd forward path).

    w1: [10, in_features], w2: [out_features, 10], gamma/beta: [10].
    Returns (w1t [in,10], w2t_scaled [10,out], bias_row [1,out]), all f32.
    """
    w1 = w1.astype(jnp.float32)
    w2 = w2.astype(jnp.float32)
    gamma = gamma.astype(jnp.float32)
    beta = beta.astype(jnp.float32)

    w1t = w1.T                                   # [in_features, HIDDEN]
    w2t_scaled = (w2 * gamma[None, :]).T         # [HIDDEN, out_features]
    bias_row = (w2 @ beta).reshape(1, -1)        # [1, out_features] == beta @ W2^T
    return w1t, w2t_scaled, bias_row


# ----------------------------------------------------------------- sizing helpers
def _round_up(x, m):
    return ((x + m - 1) // m) * m


def _sublane(itemsize):
    # f32 -> 8 sublanes per vreg tile, bf16 -> 16, int8 -> 32.
    return max(8, 32 // max(1, int(itemsize)))


def _padded_block_bytes(rows, cols, itemsize):
    """Actual VMEM footprint of a [rows, cols] block after (sublane, 128) padding."""
    return (_round_up(max(int(rows), 1), _sublane(itemsize))
            * _round_up(max(int(cols), 1), 128) * int(itemsize))


def _tpu_vmem_capacity_bytes():
    try:
        return int(pltpu.get_tpu_info().vmem_capacity_bytes)
    except Exception:
        return 128 << 20   # v5e/v6e default if query unavailable


def _pick_batch_tile(batch, in_features, out_features, itemsize, vmem_cap):
    """Pick the batch tile from the PADDED double-buffered x/out block footprint.

    Generation-aware: v7x (64 MiB VMEM / TC) gets a tighter budget and, for large
    batches, at least 2 grid steps so the 'parallel' axis can use both TensorCores.
    """
    sub = _sublane(itemsize)
    is_v7x_like = vmem_cap <= (64 << 20)

    # Double-buffered x tile + out tile, both padded to (sublane, 128) tiles.
    per_row = 2 * (_round_up(in_features, 128) + _round_up(out_features, 128)) * itemsize
    budget = (20 << 20) if is_v7x_like else (48 << 20)

    tb = budget // per_row
    tb = min(tb, 16384)                  # enough rows to amortize ~0.35us/step overhead

    if tb >= batch:
        if is_v7x_like and batch >= 64:
            # Keep >=2 grid steps so both v7x TensorCores get work.
            tb = _round_up(-(-batch // 2), sub)
        else:
            tb = batch                   # single full-extent block (no padding needed)
    else:
        tb = max(sub, (tb // sub) * sub)
    return int(tb)


def _vmem_limit_bytes(tb, in_features, out_features, act_itemsize, w_itemsize, vmem_cap):
    x_blk = _padded_block_bytes(tb, in_features, act_itemsize)
    o_blk = _padded_block_bytes(tb, out_features, act_itemsize)
    w_bytes = (_padded_block_bytes(in_features, HIDDEN, w_itemsize)
               + _padded_block_bytes(HIDDEN, out_features, w_itemsize)
               + _padded_block_bytes(1, out_features, w_itemsize))
    need = 2 * (x_blk + o_blk) + 2 * w_bytes + (4 << 20)   # headroom
    cap = (32 << 20) if vmem_cap <= (64 << 20) else (64 << 20)
    return int(max(8 << 20, min(need, cap)))


# ----------------------------------------------------------------------- forward
@functools.partial(jax.jit, static_argnames=("tb", "vmem_limit"))
def _toy_model_forward_impl(x, w1t, w2t_scaled, bias_row, *, tb, vmem_limit):
    B, in_features = x.shape
    out_features = w2t_scaled.shape[1]
    act_isz = jnp.dtype(x.dtype).itemsize
    w_isz = jnp.dtype(w1t.dtype).itemsize

    grid = (pl.cdiv(B, tb),)   # partial last block handled by Pallas (no pad/slice)

    weight_bytes = (w1t.size * w_isz + w2t_scaled.size * w_isz
                    + bias_row.size * jnp.dtype(bias_row.dtype).itemsize)
    cost = pl.CostEstimate(
        flops=2 * B * HIDDEN * (in_features + out_features),
        transcendentals=B,   # one rsqrt per row
        bytes_accessed=act_isz * B * (in_features + out_features) + weight_bytes,
    )

    resident = pl.Buffered(1)   # constant-index operands: single buffer is enough

    return pl.pallas_call(
        toy_model_kernel,
        out_shape=jax.ShapeDtypeStruct((B, out_features), x.dtype),
        grid_spec=pltpu.PrefetchScalarGridSpec(
            num_scalar_prefetch=0,
            grid=grid,
            in_specs=[
                pl.BlockSpec((tb, in_features), lambda i: (i, 0)),              # x tile
                pl.BlockSpec((in_features, HIDDEN), lambda i: (0, 0),
                             pipeline_mode=resident),                           # W1^T
                pl.BlockSpec((HIDDEN, out_features), lambda i: (0, 0),
                             pipeline_mode=resident),                           # (W2*gamma)^T
                pl.BlockSpec((1, out_features), lambda i: (0, 0),
                             pipeline_mode=resident),                           # beta @ W2^T
            ],
            out_specs=pl.BlockSpec((tb, out_features), lambda i: (i, 0)),
        ),
        compiler_params=pltpu.CompilerParams(
            dimension_semantics=("parallel",),
            vmem_limit_bytes=vmem_limit,
        ),
        cost_estimate=cost,
    )(x, w1t, w2t_scaled, bias_row)


def toy_model_forward(x, w1t, w2t_scaled, bias_row, *, batch_tile=None):
    """x: [B, in_features] (f32 or bf16).  Params from prepare_toy_model_params.
    Returns [B, out_features] in x.dtype."""
    B, in_features = x.shape
    out_features = w2t_scaled.shape[1]
    act_isz = jnp.dtype(x.dtype).itemsize
    w_isz = jnp.dtype(w1t.dtype).itemsize
    vmem_cap = _tpu_vmem_capacity_bytes()

    if batch_tile is None:
        tb = _pick_batch_tile(B, in_features, out_features, act_isz, vmem_cap)
    else:
        tb = int(batch_tile)
    if tb >= B:
        tb = B   # full-extent block along batch
    sub = _sublane(act_isz)
    assert tb == B or tb % sub == 0, \
        f"batch tile must be a multiple of {sub} sublanes (or the full batch)"

    vmem_limit = _vmem_limit_bytes(tb, in_features, out_features, act_isz, w_isz, vmem_cap)
    return _toy_model_forward_impl(x, w1t, w2t_scaled, bias_row,
                                   tb=tb, vmem_limit=vmem_limit)


# ---------------------------------------------------------------------- reference
def toy_model_reference(x, w1, w2, gamma, beta):
    hp = jax.lax.Precision.HIGHEST   # keep the reference in true f32
    h = jnp.dot(x, w1.T, precision=hp)
    h = jnp.maximum(h, 0.0)
    mean = jnp.mean(h, axis=-1, keepdims=True)
    var = jnp.mean((h - mean) ** 2, axis=-1, keepdims=True)
    hn = (h - mean) * jax.lax.rsqrt(var + LN_EPS)
    hn = hn * gamma + beta
    return jnp.dot(hn, w2.T, precision=hp)


# --------------------------------------------------------------------------- main
if __name__ == "__main__":
    in_features = 32
    out_features = 16

    key = jax.random.PRNGKey(0)
    kx, kw1, kw2, kg, kb, kx2, kx3 = jax.random.split(key, 7)

    # Deterministic parameter init (Kaiming-uniform-ish scale, like nn.Linear).
    w1 = jax.random.uniform(kw1, (HIDDEN, in_features), jnp.float32,
                            minval=-1.0, maxval=1.0) / jnp.sqrt(in_features)
    w2 = jax.random.uniform(kw2, (out_features, HIDDEN), jnp.float32,
                            minval=-1.0, maxval=1.0) / jnp.sqrt(HIDDEN)
    # Non-trivial LayerNorm affine so the gamma/beta folding is actually exercised.
    gamma = jax.random.uniform(kg, (HIDDEN,), jnp.float32, minval=0.5, maxval=1.5)
    beta = 0.1 * jax.random.normal(kb, (HIDDEN,), dtype=jnp.float32)

    # One-time param prep (transposes / folding hoisted out of the forward path).
    w1t, w2t_s, bias_row = prepare_toy_model_params(w1, w2, gamma, beta)

    # --- test 1: small batch, single grid step, f32 ---
    x = jax.random.normal(kx, (8, in_features), dtype=jnp.float32)
    out = jax.block_until_ready(toy_model_forward(x, w1t, w2t_s, bias_row))
    ref = toy_model_reference(x, w1, w2, gamma, beta)
    assert out.shape == (8, out_features)
    assert out.dtype == jnp.float32
    # 2e-3 tolerance: robust to MXU f32 matmul pass differences vs. HIGHEST reference.
    assert jnp.allclose(out, ref, atol=2e-3, rtol=2e-3), "mismatch vs reference (small)"

    # --- test 2: ragged batch + explicit tile -> multi-step grid, partial last block ---
    x2 = jax.random.normal(kx2, (200, in_features), dtype=jnp.float32)
    out2 = jax.block_until_ready(
        toy_model_forward(x2, w1t, w2t_s, bias_row, batch_tile=64))
    ref2 = toy_model_reference(x2, w1, w2, gamma, beta)
    assert out2.shape == (200, out_features)
    assert jnp.allclose(out2, ref2, atol=2e-3, rtol=2e-3), "mismatch vs reference (ragged)"

    # --- test 3: bf16 activations (half the HBM traffic), auto tile ---
    x3 = jax.random.normal(kx3, (200, in_features), dtype=jnp.float32).astype(jnp.bfloat16)
    out3 = jax.block_until_ready(toy_model_forward(x3, w1t, w2t_s, bias_row))
    ref3 = toy_model_reference(x3.astype(jnp.float32), w1, w2, gamma, beta)
    assert out3.shape == (200, out_features)
    assert out3.dtype == jnp.bfloat16
    assert jnp.allclose(out3.astype(jnp.float32), ref3, atol=1e-1, rtol=1e-1), \
        "mismatch vs reference (bf16)"

    print("KERNEL_OK")
</pallas_src>

<mosaic_0001>
module attributes {stable_mosaic.version = 11 : i64} {
  func.func @toy_model_kernel(%arg0: i32, %arg1: memref<8x32xf32, #tpu.memory_space<vmem>>, %arg2: memref<32x10xf32, #tpu.memory_space<vmem>>, %arg3: memref<10x16xf32, #tpu.memory_space<vmem>>, %arg4: memref<1x16xf32, #tpu.memory_space<vmem>>, %arg5: memref<8x16xf32, #tpu.memory_space<vmem>>) attributes {dimension_semantics = [#tpu.dimension_semantics<parallel>], iteration_bounds = array<i64: 1>, scalar_prefetch = 0 : i64, scratch_operands = 0 : i64, tpu.core_type = #tpu.core_type<tc>, window_params = [{transform_indices = @transform_0, window_bounds = array<i64: 8, 32>}, {pipeline_mode = #tpu.pipeline_mode<synchronous>, transform_indices = @transform_1, window_bounds = array<i64: 32, 10>}, {pipeline_mode = #tpu.pipeline_mode<synchronous>, transform_indices = @transform_2, window_bounds = array<i64: 10, 16>}, {pipeline_mode = #tpu.pipeline_mode<synchronous>, transform_indices = @transform_3, window_bounds = array<i64: 1, 16>}, {transform_indices = @transform_4, window_bounds = array<i64: 8, 16>}]} {
    %c0 = arith.constant 0 : index
    %c0_0 = arith.constant 0 : index
    %0 = vector.load %arg1[%c0, %c0_0] : memref<8x32xf32, #tpu.memory_space<vmem>>, vector<8x32xf32>
    %c0_1 = arith.constant 0 : index
    %c0_2 = arith.constant 0 : index
    %1 = vector.load %arg2[%c0_1, %c0_2] : memref<32x10xf32, #tpu.memory_space<vmem>>, vector<32x10xf32>
    %cst = arith.constant dense<0.000000e+00> : vector<8x10xf32>
    %2 = tpu.matmul %0, %1, %cst {dimension_numbers = #tpu.dot_dimension_numbers<[1], [0], [0], [1], [0, 0, 1, 1], [], []>} : vector<8x32xf32>, vector<32x10xf32>, vector<8x10xf32> -> vector<8x10xf32>
    %cst_3 = arith.constant 0.000000e+00 : f32
    %3 = vector.broadcast %cst_3 : f32 to vector<8x10xf32>
    %4 = arith.maximumf %2, %3 : vector<8x10xf32>
    %cst_4 = arith.constant dense<0.000000e+00> : vector<8xf32>
    %5 = vector.multi_reduction <add>, %4, %cst_4 [1] : vector<8x10xf32> to vector<8xf32>
    %6 = vector.shape_cast %5 : vector<8xf32> to vector<8x1xf32>
    %cst_5 = arith.constant 1.000000e+01 : f32
    %7 = vector.broadcast %cst_5 : f32 to vector<8x1xf32>
    %8 = arith.divf %6, %7 : vector<8x1xf32>
    %9 = vector.broadcast %8 : vector<8x1xf32> to vector<8x10xf32>
    %10 = arith.subf %4, %9 : vector<8x10xf32>
    %11 = arith.mulf %10, %10 : vector<8x10xf32>
    %cst_6 = arith.constant dense<0.000000e+00> : vector<8xf32>
    %12 = vector.multi_reduction <add>, %11, %cst_6 [1] : vector<8x10xf32> to vector<8xf32>
    %13 = vector.shape_cast %12 : vector<8xf32> to vector<8x1xf32>
    %cst_7 = arith.constant 1.000000e+01 : f32
    %14 = vector.broadcast %cst_7 : f32 to vector<8x1xf32>
    %15 = arith.divf %13, %14 : vector<8x1xf32>
    %cst_8 = arith.constant 9.99999974E-6 : f32
    %16 = vector.broadcast %cst_8 : f32 to vector<8x1xf32>
    %17 = arith.addf %15, %16 : vector<8x1xf32>
    %18 = math.rsqrt %17 : vector<8x1xf32>
    %19 = vector.broadcast %18 : vector<8x1xf32> to vector<8x10xf32>
    %20 = arith.mulf %10, %19 : vector<8x10xf32>
    %c0_9 = arith.constant 0 : index
    %c0_10 = arith.constant 0 : index
    %21 = vector.load %arg3[%c0_9, %c0_10] : memref<10x16xf32, #tpu.memory_space<vmem>>, vector<10x16xf32>
    %cst_11 = arith.constant dense<0.000000e+00> : vector<8x16xf32>
    %22 = tpu.matmul %20, %21, %cst_11 {dimension_numbers = #tpu.dot_dimension_numbers<[1], [0], [0], [1], [0, 0, 1, 1], [], []>} : vector<8x10xf32>, vector<10x16xf32>, vector<8x16xf32> -> vector<8x16xf32>
    %c0_12 = arith.constant 0 : index
    %c0_13 = arith.constant 0 : index
    %23 = vector.load %arg4[%c0_12, %c0_13] : memref<1x16xf32, #tpu.memory_space<vmem>>, vector<1x16xf32>
    %24 = vector.broadcast %23 : vector<1x16xf32> to vector<8x16xf32>
    %25 = arith.addf %22, %24 : vector<8x16xf32>
    %c0_14 = arith.constant 0 : index
    %c0_15 = arith.constant 0 : index
    %26 = vector.load %arg5[%c0_14, %c0_15] : memref<8x16xf32, #tpu.memory_space<vmem>>, vector<8x16xf32>
    tpu.vector_store %arg5[%c0_14, %c0_15], %25 {strides = array<i32>} : memref<8x16xf32, #tpu.memory_space<vmem>>, vector<8x16xf32>,
    return
  }
  func.func @transform_0(%arg0: i32) -> (i32, i32) {
    %c0_i32 = arith.constant 0 : i32
    %c0_i32_0 = arith.constant 0 : i32
    return %arg0, %c0_i32 : i32, i32
  }
  func.func @transform_1(%arg0: i32) -> (i32, i32) {
    %c0_i32 = arith.constant 0 : i32
    %c0_i32_0 = arith.constant 0 : i32
    %c0_i32_1 = arith.constant 0 : i32
    return %c0_i32, %c0_i32_0 : i32, i32
  }
  func.func @transform_2(%arg0: i32) -> (i32, i32) {
    %c0_i32 = arith.constant 0 : i32
    %c0_i32_0 = arith.constant 0 : i32
    %c0_i32_1 = arith.constant 0 : i32
    return %c0_i32, %c0_i32_0 : i32, i32
  }
  func.func @transform_3(%arg0: i32) -> (i32, i32) {
    %c0_i32 = arith.constant 0 : i32
    %c0_i32_0 = arith.constant 0 : i32
    %c0_i32_1 = arith.constant 0 : i32
    return %c0_i32, %c0_i32_0 : i32, i32
  }
  func.func @transform_4(%arg0: i32) -> (i32, i32) {
    %c0_i32 = arith.constant 0 : i32
    %c0_i32_0 = arith.constant 0 : i32
    return %arg0, %c0_i32 : i32, i32
  }
}

</mosaic_0001>

<bundles_post_ra>
// kernel: _toy_model_forward_impl.1
= control target key start
LH: loop header
LB: loop body
LE: loop exit
PB: predicated region body
PF: predicated region fallthrough
CT: control target
= control target key end

     0   :  { %v272_v1 = vmov 0.0   ;;  %vm273_vm0 = vmmov 0   ;;  %s330_s0 = inlined_call_operand.vmem [shape: f32[8,32], index: 0, kind: input, shape index: {}]   ;;  %s331_s1 = inlined_call_operand.vmem [shape: f32[32,10], index: 1, kind: input, shape index: {}]   ;;  %s332_s2 = inlined_call_operand.vmem [shape: f32[10,16], index: 2, kind: input, shape index: {}]   ;;  %s333_s3 = inlined_call_operand.vmem [shape: f32[1,16], index: 3, kind: input, shape index: {}]   ;;  %s334_s4 = inlined_call_operand.hbm [shape: f32[8,16], index: 4, kind: output, shape index: {}]  }
   0x1   :  { %v22_v0 = vld [vmem:[%s331_s1 + $0x18] sm:$0xff]  ;;  %227 = vmatprep.subr.mxu0 %v272_v1  ;;  %v21_v2 = vld [vmem:[%s331_s1 + $0x10] sm:$0xff]  ;;  %235 = vmatprep.mubr.msk.f32.mxu0 %vm273_vm0, %v272_v1 }
   0x2   :  { %9 = vsyncpa [#allocation3], 0  ;;  %228 = vmatpush3.msra.mxu0 %v22_v0  ;;  %238 = vmatprep.subr.mxu1 %v272_v1  ;;  %v20_v3 = vld [vmem:[%s331_s1 + $0x8] sm:$0xff]  ;;  %v19_v4 = vld [vmem:[%s331_s1] sm:$0xff]  ;;  %vm23_vm1 = vcmask 261120   ;;  %vm98_vm2 = vcmask 80896  }
   0x3   :  { %229 = vmatprep.subr.mxu0 %v272_v1  ;;  %242 = vmatprep.mubr.msk.f32.mxu1 %vm273_vm0, %v272_v1  ;;  %v18_v5 = vld [vmem:[%s330_s0] sm:$0xff]  ;;  %v114_v15 = vld [vmem:[%s332_s2 + $0x8] sm:$0x3]  ;;  %vm125_vm3 = vcmask 1041408   ;;  %s274_s29 = smov [#allocation2]   ;;  %vm199_vm4 = vcmask 130048  }
   0x4   :  { %230 = vmatpush3.msra.mxu0 %v21_v2  ;;  %v113_v16 = vld [vmem:[%s332_s2] sm:$0xff]  ;;  %239 = vmatpush3.msk.msra.mxu1 %vm125_vm3, %v114_v15  ;;  %s207_s30 = sshll.u32 %s274_s29, 4  ;;  %s208_s30 = int_to_ptr.vmem [resolvable:$true] %s207_s30 }
   0x5   :  { %231 = vmatprep.subr.mxu0 %v272_v1  ;;  %240 = vmatprep.subr.mxu1 %v272_v1  ;;  %v216_v22 = vld [vmem:[%s333_s3] ss:$0 sm:$0xff]  ;;  %s250_s2 = scalar_lea.vmem %s208_s30, 128  ;;  %p255_p1 = scmp.lt.s32.totalorder %s208_s30, %s208_s30 }
   0x6   :  { %232 = vmatpush3.msra.mxu0 %v20_v3  ;;  %241 = vmatpush3.msra.mxu1 %v113_v16  ;;  %p251_p0 = scmp.ne.s32.totalorder %s208_s30, %s250_s2  ;;  %p256_p2 = scmp.lt.s32.totalorder %s250_s2, %s250_s2 }
   0x7   :  { %233 = vmatprep.subr.mxu0 %v272_v1 }
   0x8   :  { %234 = vmatpush3.msra.mxu0 %v19_v4  ;;  %p257_p3 = por %p256_p2, %p255_p1 }
   0x9   :  { %236 = vmatmul.mubr.msk.f32.vlgmr.msra.gmra.mxu0 %vm23_vm1, %v18_v5 }
   0xa   :  { %p258_p4 = pnand %p257_p3, %p251_p0 }
  0xc9   :  { %v93_v6 = vpop.f32.mrf.mxu0 }
  0xca   :  { %v97_v7 = vmax.f32 %v93_v6, 0.0 }
  0xcb   :  { %v237_v8 = vpop.f32.mrf.mxu0 }
  0xcc   :  { %v99_v9 = vsel %vm98_vm2, %v97_v7, 0.0 }
  0xcd   :  { %100 = vadd.xlane.f32.xlu0 %v99_v9 }
 0x156   :  { %v101_v10 = vpop.xlane.xlu0 %100 }
 0x157   :  { %v103_v11 = vmul.f32 0.1, %v101_v10 }
 0x159   :  { %v104_v12 = vsub.f32 %v97_v7, %v103_v11 }
 0x15b   :  { %v105_v13 = vmul.f32 %v104_v12, %v104_v12 }
 0x15d   :  { %v106_v14 = vsel %vm98_vm2, %v105_v13, 0.0 }
 0x15e   :  { %107 = vadd.xlane.f32.xlu0 %v106_v14 }
 0x1e7   :  { %v108_v17 = vpop.xlane.xlu0 %107 }
 0x1e8   :  { %v109_v18 = vmul.f32 0.1, %v108_v17 }
 0x1ea   :  { %v110_v19 = vadd.f32 1e-05, %v109_v18 }
 0x1ec   :  { %248 = vrsqrt.f32 %v110_v19 }
 0x1f9   :  { %v249_v20 = vpop.eup %248 }
 0x1fa   :  { %v112_v21 = vmul.f32 %v249_v20, %v104_v12 }
 0x1fc   :  { %243 = vmatmul.mubr.msk.f32.vlgmr.msra.gmra.mxu1 %vm98_vm2, %v112_v21 }
 0x2bc   :  { %v195_v23 = vpop.f32.mrf.mxu1 }
 0x2bd   :  { %v196_v24 = vadd.f32 %v216_v22, %v195_v23 }
 0x2be   :  { %v244_v25 = vpop.f32.mrf.mxu1 }
 0x2bf   :  { %200 = vst.msk [vmem:[#allocation2] sm:$0xff] %vm199_vm4, %v196_v24 }
 0x2c0   :  { %261 = shalt.err (!%p258_p4)
}
 0x2c1   :  { %210 = dma.vmem_to_hbm [thread:$0]  %s208_s30, 128, %s334_s4, [#allocation3]  }
 0x2c2   :  { %270 = dma.done.wait [#allocation3], 128  }
 0x2c3   :  { %271 = vsyncadd [#allocation3], 4294967168 }
 0x2c4   :  { %214 = vsyncpa [#allocation3], 1 }

</bundles_post_ra>
